<compile_context>
chip_gen: v7x
topology: tpu7x:2x2x1
jax: 0.10.0
libtpu: 0.0.40
codegen_flags: <defaults>
</compile_context>

<pallas_src>
import functools

import jax
import jax.numpy as jnp
from jax.experimental import pallas as pl
from jax.experimental.pallas import tpu as pltpu


def _vmem():
    return pl.BlockSpec(memory_space=pltpu.MemorySpace.VMEM)


# ----------------------------------------------------------------------------
# Fused Pallas kernel: embedding -> n_layers x GCL -> embedding_out
# ----------------------------------------------------------------------------
def _gnn_kernel(rc_ref, h_ref,
                emb_w_ref, emb_b_ref,
                w1_ref, b1_ref, w2_ref, b2_ref,
                w3_ref, b3_ref, w4_ref, b4_ref,
                out_w_ref, out_b_ref,
                o_ref, *,
                n_layers, n_nodes, n_edges, hidden_nf, normalization_factor):
    f32 = jnp.float32

    # ---- embedding: h = h_in @ W_emb + b_emb ------------------------------ (N, H)
    h = (jnp.dot(h_ref[...], emb_w_ref[...], preferred_element_type=f32)
         + emb_b_ref[...])

    # ---- in-kernel one-hot selection matrices ------------------------------
    # rc = [row; col] as (2E, 1) int32.  sel[e, n] = 1 iff node n is the endpoint
    # of stacked edge e (rows 0..E-1 -> h[row], rows E..2E-1 -> h[col]).
    rc = rc_ref[...]                                                  # (2E, 1) i32
    lane_ids = jax.lax.broadcasted_iota(jnp.int32, (2 * n_edges, n_nodes), 1)
    sel = (lane_ids == rc).astype(f32)                                # (2E, N)
    sel_row = sel[:n_edges]                                           # (E, N)

    inv_norm = 1.0 / normalization_factor

    # ---- n_layers GCL blocks; h stays resident in VMEM ---------------------
    for l in range(n_layers):
        # gather both endpoints with a single MXU push: (2E, N) @ (N, H)
        ht = jnp.dot(sel, h, preferred_element_type=f32)              # (2E, H)
        src = ht[:n_edges]                                            # h[row]
        tgt = ht[n_edges:]                                            # h[col]

        # edge MLP: Linear(2H -> H) on concat([src, tgt]) == src@W1a + tgt@W1b
        w1 = w1_ref[l]                                                # (2H, H)
        e = (jnp.dot(src, w1[:hidden_nf], preferred_element_type=f32)
             + jnp.dot(tgt, w1[hidden_nf:], preferred_element_type=f32)
             + b1_ref[l])
        e = e * jax.nn.sigmoid(e)                                     # SiLU
        e = jnp.dot(e, w2_ref[l], preferred_element_type=f32) + b2_ref[l]
        e = e * jax.nn.sigmoid(e)                                     # SiLU

        # unsorted_segment_sum over `row`: contract sel_row over its edge axis,
        # i.e. srow.T @ e -- no transposed selection matrix materialized.
        agg = jax.lax.dot_general(
            sel_row, e,
            dimension_numbers=(((0,), (0,)), ((), ())),
            preferred_element_type=f32)                               # (N, H)
        if normalization_factor != 1.0:                               # 'sum' agg
            agg = agg * inv_norm

        # node MLP: Linear(2H -> H) on concat([h, agg]) == h@W3a + agg@W3b
        w3 = w3_ref[l]                                                # (2H, H)
        m = (jnp.dot(h, w3[:hidden_nf], preferred_element_type=f32)
             + jnp.dot(agg, w3[hidden_nf:], preferred_element_type=f32)
             + b3_ref[l])
        m = m * jax.nn.sigmoid(m)                                     # SiLU
        m = jnp.dot(m, w4_ref[l], preferred_element_type=f32) + b4_ref[l]

        h = h + m                                                     # residual

    # ---- output projection --------------------------------------------------
    o_ref[...] = (jnp.dot(h, out_w_ref[...], preferred_element_type=f32)
                  + out_b_ref[...])


# ----------------------------------------------------------------------------
# Wrapper: single pallas_call for the whole forward pass
# ----------------------------------------------------------------------------
def gnn_forward(params, h, row, col, normalization_factor=1.0):
    n = int(h.shape[0])
    e = int(row.shape[0])
    n_layers, two_h, _ = params["w1"].shape
    hidden_nf = two_h // 2
    out_nf = params["out_w"].shape[1]

    # [row; col] stacked -> (2E, 1) int32; one-hot construction happens in-kernel.
    rc = jnp.concatenate([row, col]).astype(jnp.int32)[:, None]

    kern = functools.partial(
        _gnn_kernel,
        n_layers=int(n_layers), n_nodes=n, n_edges=e, hidden_nf=int(hidden_nf),
        normalization_factor=float(normalization_factor))

    return pl.pallas_call(
        kern,
        out_shape=jax.ShapeDtypeStruct((n, out_nf), jnp.float32),
        in_specs=[_vmem()] * 14,
        out_specs=_vmem(),
    )(rc, h.astype(jnp.float32),
      params["emb_w"], params["emb_b"],
      params["w1"], params["b1"], params["w2"], params["b2"],
      params["w3"], params["b3"], params["w4"], params["b4"],
      params["out_w"], params["out_b"])


# ----------------------------------------------------------------------------
# Parameter construction (deterministic, synthetic) -- layer weights stacked
# ----------------------------------------------------------------------------
def init_params(key, in_node_nf, hidden_nf, out_node_nf, n_layers):
    def dense(key, fan_in, fan_out):
        kw, kb = jax.random.split(key)
        scale = 1.0 / jnp.sqrt(fan_in)
        w = jax.random.uniform(kw, (fan_in, fan_out), jnp.float32, -scale, scale)
        b = jax.random.uniform(kb, (1, fan_out), jnp.float32, -scale, scale)
        return w, b

    keys = jax.random.split(key, 2 + n_layers)
    emb_w, emb_b = dense(keys[0], in_node_nf, hidden_nf)
    out_w, out_b = dense(keys[1], hidden_nf, out_node_nf)

    w1s, b1s, w2s, b2s, w3s, b3s, w4s, b4s = ([] for _ in range(8))
    for i in range(n_layers):
        lk = jax.random.split(keys[2 + i], 4)
        w1, b1 = dense(lk[0], 2 * hidden_nf, hidden_nf)   # edge MLP: Linear(2H, H)
        w2, b2 = dense(lk[1], hidden_nf, hidden_nf)       # edge MLP: Linear(H, H)
        w3, b3 = dense(lk[2], 2 * hidden_nf, hidden_nf)   # node MLP: Linear(2H, H)
        w4, b4 = dense(lk[3], hidden_nf, hidden_nf)       # node MLP: Linear(H, H)
        w1s.append(w1); b1s.append(b1); w2s.append(w2); b2s.append(b2)
        w3s.append(w3); b3s.append(b3); w4s.append(w4); b4s.append(b4)

    stack = lambda xs: jnp.stack(xs, axis=0)
    return dict(emb_w=emb_w, emb_b=emb_b, out_w=out_w, out_b=out_b,
                w1=stack(w1s), b1=stack(b1s), w2=stack(w2s), b2=stack(b2s),
                w3=stack(w3s), b3=stack(b3s), w4=stack(w4s), b4=stack(b4s))


# ----------------------------------------------------------------------------
# Pure-JAX reference (matches PyTorch GNN.forward with edge_attr=None, 'sum')
# ----------------------------------------------------------------------------
def gnn_reference(params, h, row, col, normalization_factor=1.0):
    silu = lambda x: x * jax.nn.sigmoid(x)
    n = h.shape[0]
    hdim = params["w2"].shape[-1]
    h = h @ params["emb_w"] + params["emb_b"]
    for l in range(params["w1"].shape[0]):
        src, tgt = h[row], h[col]
        w1 = params["w1"][l]
        e = silu(src @ w1[:hdim] + tgt @ w1[hdim:] + params["b1"][l])
        e = silu(e @ params["w2"][l] + params["b2"][l])
        agg = jax.ops.segment_sum(e, row, num_segments=n) / normalization_factor
        w3 = params["w3"][l]
        m = silu(h @ w3[:hdim] + agg @ w3[hdim:] + params["b3"][l])
        m = m @ params["w4"][l] + params["b4"][l]
        h = h + m
    return h @ params["out_w"] + params["out_b"]


# ----------------------------------------------------------------------------
if __name__ == "__main__":
    key = jax.random.PRNGKey(0)
    k_param, k_h, k_row, k_col = jax.random.split(key, 4)

    # Small, module-consistent shapes
    N = 8                 # nodes
    E = 16                # edges
    IN_NODE_NF = 8        # node feature dim
    HIDDEN = 32
    N_LAYERS = 3
    OUT_NODE_NF = IN_NODE_NF   # out_node_nf=None -> in_node_nf

    params = init_params(k_param, IN_NODE_NF, HIDDEN, OUT_NODE_NF, N_LAYERS)

    h = jax.random.normal(k_h, (N, IN_NODE_NF), jnp.float32)
    row = jax.random.randint(k_row, (E,), 0, N)
    col = jax.random.randint(k_col, (E,), 0, N)
    # edge_attr is None (in_edge_nf = 0), aggregation_method='sum', norm_factor=1.

    out = gnn_forward(params, h, row, col, normalization_factor=1.0)
    out = jax.block_until_ready(out)

    ref = gnn_reference(params, h, row, col, normalization_factor=1.0)
    assert out.shape == (N, OUT_NODE_NF)
    assert jnp.allclose(out, ref, rtol=1e-3, atol=1e-3), "mismatch vs JAX reference"

    print("KERNEL_OK")
</pallas_src>

<mosaic_0001>
module attributes {stable_mosaic.version = 11 : i64} {
  func.func @_gnn_kernel(%arg0: memref<32x1xi32, #tpu.memory_space<vmem>>, %arg1: memref<8x8xf32, #tpu.memory_space<vmem>>, %arg2: memref<8x32xf32, #tpu.memory_space<vmem>>, %arg3: memref<1x32xf32, #tpu.memory_space<vmem>>, %arg4: memref<3x64x32xf32, #tpu.memory_space<vmem>>, %arg5: memref<3x1x32xf32, #tpu.memory_space<vmem>>, %arg6: memref<3x32x32xf32, #tpu.memory_space<vmem>>, %arg7: memref<3x1x32xf32, #tpu.memory_space<vmem>>, %arg8: memref<3x64x32xf32, #tpu.memory_space<vmem>>, %arg9: memref<3x1x32xf32, #tpu.memory_space<vmem>>, %arg10: memref<3x32x32xf32, #tpu.memory_space<vmem>>, %arg11: memref<3x1x32xf32, #tpu.memory_space<vmem>>, %arg12: memref<32x8xf32, #tpu.memory_space<vmem>>, %arg13: memref<1x8xf32, #tpu.memory_space<vmem>>, %arg14: memref<8x8xf32, #tpu.memory_space<vmem>>) attributes {dimension_semantics = [], scalar_prefetch = 0 : i64, scratch_operands = 0 : i64, tpu.core_type = #tpu.core_type<tc>} {
    %c0 = arith.constant 0 : index
    %c0_0 = arith.constant 0 : index
    %0 = vector.load %arg1[%c0, %c0_0] : memref<8x8xf32, #tpu.memory_space<vmem>>, vector<8x8xf32>
    %c0_1 = arith.constant 0 : index
    %c0_2 = arith.constant 0 : index
    %1 = vector.load %arg2[%c0_1, %c0_2] : memref<8x32xf32, #tpu.memory_space<vmem>>, vector<8x32xf32>
    %cst = arith.constant dense<0.000000e+00> : vector<8x32xf32>
    %2 = tpu.matmul %0, %1, %cst {dimension_numbers = #tpu.dot_dimension_numbers<[1], [0], [0], [1], [0, 0, 1, 1], [], []>} : vector<8x8xf32>, vector<8x32xf32>, vector<8x32xf32> -> vector<8x32xf32>
    %c0_3 = arith.constant 0 : index
    %c0_4 = arith.constant 0 : index
    %3 = vector.load %arg3[%c0_3, %c0_4] : memref<1x32xf32, #tpu.memory_space<vmem>>, vector<1x32xf32>
    %4 = vector.broadcast %3 : vector<1x32xf32> to vector<8x32xf32>
    %5 = arith.addf %2, %4 : vector<8x32xf32>
    %c0_5 = arith.constant 0 : index
    %c0_6 = arith.constant 0 : index
    %6 = vector.load %arg0[%c0_5, %c0_6] : memref<32x1xi32, #tpu.memory_space<vmem>>, vector<32x1xi32>
    %7 = tpu.iota {dimensions = array<i32: 1>} : vector<32x8xi32>
    %8 = vector.broadcast %6 : vector<32x1xi32> to vector<32x8xi32>
    %9 = arith.cmpi eq, %7, %8 : vector<32x8xi32>
    %10 = arith.extui %9 : vector<32x8xi1> to vector<32x8xi32>
    %11 = arith.sitofp %10 : vector<32x8xi32> to vector<32x8xf32>
    %12 = vector.extract_strided_slice %11 {offsets = [0, 0], sizes = [16, 8], strides = [1, 1]} : vector<32x8xf32> to vector<16x8xf32>
    %cst_7 = arith.constant dense<0.000000e+00> : vector<32x32xf32>
    %13 = tpu.matmul %11, %5, %cst_7 {dimension_numbers = #tpu.dot_dimension_numbers<[1], [0], [0], [1], [0, 0, 1, 1], [], []>} : vector<32x8xf32>, vector<8x32xf32>, vector<32x32xf32> -> vector<32x32xf32>
    %14 = vector.extract_strided_slice %13 {offsets = [0, 0], sizes = [16, 32], strides = [1, 1]} : vector<32x32xf32> to vector<16x32xf32>
    %15 = vector.extract_strided_slice %13 {offsets = [16, 0], sizes = [16, 32], strides = [1, 1]} : vector<32x32xf32> to vector<16x32xf32>
    %c0_8 = arith.constant 0 : index
    %c0_9 = arith.constant 0 : index
    %c0_10 = arith.constant 0 : index
    %16 = vector.load %arg4[%c0_8, %c0_9, %c0_10] : memref<3x64x32xf32, #tpu.memory_space<vmem>>, vector<1x64x32xf32>
    %17 = vector.shape_cast %16 : vector<1x64x32xf32> to vector<64x32xf32>
    %18 = vector.extract_strided_slice %17 {offsets = [0, 0], sizes = [32, 32], strides = [1, 1]} : vector<64x32xf32> to vector<32x32xf32>
    %cst_11 = arith.constant dense<0.000000e+00> : vector<16x32xf32>
    %19 = tpu.matmul %14, %18, %cst_11 {dimension_numbers = #tpu.dot_dimension_numbers<[1], [0], [0], [1], [0, 0, 1, 1], [], []>} : vector<16x32xf32>, vector<32x32xf32>, vector<16x32xf32> -> vector<16x32xf32>
    %20 = vector.extract_strided_slice %17 {offsets = [32, 0], sizes = [32, 32], strides = [1, 1]} : vector<64x32xf32> to vector<32x32xf32>
    %cst_12 = arith.constant dense<0.000000e+00> : vector<16x32xf32>
    %21 = tpu.matmul %15, %20, %cst_12 {dimension_numbers = #tpu.dot_dimension_numbers<[1], [0], [0], [1], [0, 0, 1, 1], [], []>} : vector<16x32xf32>, vector<32x32xf32>, vector<16x32xf32> -> vector<16x32xf32>
    %22 = arith.addf %19, %21 : vector<16x32xf32>
    %c0_13 = arith.constant 0 : index
    %c0_14 = arith.constant 0 : index
    %c0_15 = arith.constant 0 : index
    %23 = vector.load %arg5[%c0_13, %c0_14, %c0_15] : memref<3x1x32xf32, #tpu.memory_space<vmem>>, vector<1x1x32xf32>
    %24 = vector.shape_cast %23 : vector<1x1x32xf32> to vector<1x32xf32>
    %25 = vector.broadcast %24 : vector<1x32xf32> to vector<16x32xf32>
    %26 = arith.addf %22, %25 : vector<16x32xf32>
    %27 = arith.negf %26 : vector<16x32xf32>
    %28 = math.exp %27 : vector<16x32xf32>
    %cst_16 = arith.constant 1.000000e+00 : f32
    %29 = vector.broadcast %cst_16 : f32 to vector<16x32xf32>
    %30 = arith.addf %29, %28 : vector<16x32xf32>
    %31 = arith.divf %29, %30 : vector<16x32xf32>
    %32 = arith.mulf %26, %31 : vector<16x32xf32>
    %c0_17 = arith.constant 0 : index
    %c0_18 = arith.constant 0 : index
    %c0_19 = arith.constant 0 : index
    %33 = vector.load %arg6[%c0_17, %c0_18, %c0_19] : memref<3x32x32xf32, #tpu.memory_space<vmem>>, vector<1x32x32xf32>
    %34 = vector.shape_cast %33 : vector<1x32x32xf32> to vector<32x32xf32>
    %cst_20 = arith.constant dense<0.000000e+00> : vector<16x32xf32>
    %35 = tpu.matmul %32, %34, %cst_20 {dimension_numbers = #tpu.dot_dimension_numbers<[1], [0], [0], [1], [0, 0, 1, 1], [], []>} : vector<16x32xf32>, vector<32x32xf32>, vector<16x32xf32> -> vector<16x32xf32>
    %c0_21 = arith.constant 0 : index
    %c0_22 = arith.constant 0 : index
    %c0_23 = arith.constant 0 : index
    %36 = vector.load %arg7[%c0_21, %c0_22, %c0_23] : memref<3x1x32xf32, #tpu.memory_space<vmem>>, vector<1x1x32xf32>
    %37 = vector.shape_cast %36 : vector<1x1x32xf32> to vector<1x32xf32>
    %38 = vector.broadcast %37 : vector<1x32xf32> to vector<16x32xf32>
    %39 = arith.addf %35, %38 : vector<16x32xf32>
    %40 = arith.negf %39 : vector<16x32xf32>
    %41 = math.exp %40 : vector<16x32xf32>
    %cst_24 = arith.constant 1.000000e+00 : f32
    %42 = vector.broadcast %cst_24 : f32 to vector<16x32xf32>
    %43 = arith.addf %42, %41 : vector<16x32xf32>
    %44 = arith.divf %42, %43 : vector<16x32xf32>
    %45 = arith.mulf %39, %44 : vector<16x32xf32>
    %cst_25 = arith.constant dense<0.000000e+00> : vector<8x32xf32>
    %46 = tpu.matmul %12, %45, %cst_25 {dimension_numbers = #tpu.dot_dimension_numbers<[0], [0], [1], [1], [0, 1, 1, 1], [], []>} : vector<16x8xf32>, vector<16x32xf32>, vector<8x32xf32> -> vector<8x32xf32>
    %c0_26 = arith.constant 0 : index
    %c0_27 = arith.constant 0 : index
    %c0_28 = arith.constant 0 : index
    %47 = vector.load %arg8[%c0_26, %c0_27, %c0_28] : memref<3x64x32xf32, #tpu.memory_space<vmem>>, vector<1x64x32xf32>
    %48 = vector.shape_cast %47 : vector<1x64x32xf32> to vector<64x32xf32>
    %49 = vector.extract_strided_slice %48 {offsets = [0, 0], sizes = [32, 32], strides = [1, 1]} : vector<64x32xf32> to vector<32x32xf32>
    %cst_29 = arith.constant dense<0.000000e+00> : vector<8x32xf32>
    %50 = tpu.matmul %5, %49, %cst_29 {dimension_numbers = #tpu.dot_dimension_numbers<[1], [0], [0], [1], [0, 0, 1, 1], [], []>} : vector<8x32xf32>, vector<32x32xf32>, vector<8x32xf32> -> vector<8x32xf32>
    %51 = vector.extract_strided_slice %48 {offsets = [32, 0], sizes = [32, 32], strides = [1, 1]} : vector<64x32xf32> to vector<32x32xf32>
    %cst_30 = arith.constant dense<0.000000e+00> : vector<8x32xf32>
    %52 = tpu.matmul %46, %51, %cst_30 {dimension_numbers = #tpu.dot_dimension_numbers<[1], [0], [0], [1], [0, 0, 1, 1], [], []>} : vector<8x32xf32>, vector<32x32xf32>, vector<8x32xf32> -> vector<8x32xf32>
    %53 = arith.addf %50, %52 : vector<8x32xf32>
    %c0_31 = arith.constant 0 : index
    %c0_32 = arith.constant 0 : index
    %c0_33 = arith.constant 0 : index
    %54 = vector.load %arg9[%c0_31, %c0_32, %c0_33] : memref<3x1x32xf32, #tpu.memory_space<vmem>>, vector<1x1x32xf32>
    %55 = vector.shape_cast %54 : vector<1x1x32xf32> to vector<1x32xf32>
    %56 = vector.broadcast %55 : vector<1x32xf32> to vector<8x32xf32>
    %57 = arith.addf %53, %56 : vector<8x32xf32>
    %58 = arith.negf %57 : vector<8x32xf32>
    %59 = math.exp %58 : vector<8x32xf32>
    %cst_34 = arith.constant 1.000000e+00 : f32
    %60 = vector.broadcast %cst_34 : f32 to vector<8x32xf32>
    %61 = arith.addf %60, %59 : vector<8x32xf32>
    %62 = arith.divf %60, %61 : vector<8x32xf32>
    %63 = arith.mulf %57, %62 : vector<8x32xf32>
    %c0_35 = arith.constant 0 : index
    %c0_36 = arith.constant 0 : index
    %c0_37 = arith.constant 0 : index
    %64 = vector.load %arg10[%c0_35, %c0_36, %c0_37] : memref<3x32x32xf32, #tpu.memory_space<vmem>>, vector<1x32x32xf32>
    %65 = vector.shape_cast %64 : vector<1x32x32xf32> to vector<32x32xf32>
    %cst_38 = arith.constant dense<0.000000e+00> : vector<8x32xf32>
    %66 = tpu.matmul %63, %65, %cst_38 {dimension_numbers = #tpu.dot_dimension_numbers<[1], [0], [0], [1], [0, 0, 1, 1], [], []>} : vector<8x32xf32>, vector<32x32xf32>, vector<8x32xf32> -> vector<8x32xf32>
    %c0_39 = arith.constant 0 : index
    %c0_40 = arith.constant 0 : index
    %c0_41 = arith.constant 0 : index
    %67 = vector.load %arg11[%c0_39, %c0_40, %c0_41] : memref<3x1x32xf32, #tpu.memory_space<vmem>>, vector<1x1x32xf32>
    %68 = vector.shape_cast %67 : vector<1x1x32xf32> to vector<1x32xf32>
    %69 = vector.broadcast %68 : vector<1x32xf32> to vector<8x32xf32>
    %70 = arith.addf %66, %69 : vector<8x32xf32>
    %71 = arith.addf %5, %70 : vector<8x32xf32>
    %cst_42 = arith.constant dense<0.000000e+00> : vector<32x32xf32>
    %72 = tpu.matmul %11, %71, %cst_42 {dimension_numbers = #tpu.dot_dimension_numbers<[1], [0], [0], [1], [0, 0, 1, 1], [], []>} : vector<32x8xf32>, vector<8x32xf32>, vector<32x32xf32> -> vector<32x32xf32>
    %73 = vector.extract_strided_slice %72 {offsets = [0, 0], sizes = [16, 32], strides = [1, 1]} : vector<32x32xf32> to vector<16x32xf32>
    %74 = vector.extract_strided_slice %72 {offsets = [16, 0], sizes = [16, 32], strides = [1, 1]} : vector<32x32xf32> to vector<16x32xf32>
    %c1 = arith.constant 1 : index
    %c0_43 = arith.constant 0 : index
    %c0_44 = arith.constant 0 : index
    %75 = vector.load %arg4[%c1, %c0_43, %c0_44] : memref<3x64x32xf32, #tpu.memory_space<vmem>>, vector<1x64x32xf32>
    %76 = vector.shape_cast %75 : vector<1x64x32xf32> to vector<64x32xf32>
    %77 = vector.extract_strided_slice %76 {offsets = [0, 0], sizes = [32, 32], strides = [1, 1]} : vector<64x32xf32> to vector<32x32xf32>
    %cst_45 = arith.constant dense<0.000000e+00> : vector<16x32xf32>
    %78 = tpu.matmul %73, %77, %cst_45 {dimension_numbers = #tpu.dot_dimension_numbers<[1], [0], [0], [1], [0, 0, 1, 1], [], []>} : vector<16x32xf32>, vector<32x32xf32>, vector<16x32xf32> -> vector<16x32xf32>
    %79 = vector.extract_strided_slice %76 {offsets = [32, 0], sizes = [32, 32], strides = [1, 1]} : vector<64x32xf32> to vector<32x32xf32>
    %cst_46 = arith.constant dense<0.000000e+00> : vector<16x32xf32>
    %80 = tpu.matmul %74, %79, %cst_46 {dimension_numbers = #tpu.dot_dimension_numbers<[1], [0], [0], [1], [0, 0, 1, 1], [], []>} : vector<16x32xf32>, vector<32x32xf32>, vector<16x32xf32> -> vector<16x32xf32>
    %81 = arith.addf %78, %80 : vector<16x32xf32>
    %c1_47 = arith.constant 1 : index
    %c0_48 = arith.constant 0 : index
    %c0_49 = arith.constant 0 : index
    %82 = vector.load %arg5[%c1_47, %c0_48, %c0_49] : memref<3x1x32xf32, #tpu.memory_space<vmem>>, vector<1x1x32xf32>
    %83 = vector.shape_cast %82 : vector<1x1x32xf32> to vector<1x32xf32>
    %84 = vector.broadcast %83 : vector<1x32xf32> to vector<16x32xf32>
    %85 = arith.addf %81, %84 : vector<16x32xf32>
    %86 = arith.negf %85 : vector<16x32xf32>
    %87 = math.exp %86 : vector<16x32xf32>
    %cst_50 = arith.constant 1.000000e+00 : f32
    %88 = vector.broadcast %cst_50 : f32 to vector<16x32xf32>
    %89 = arith.addf %88, %87 : vector<16x32xf32>
    %90 = arith.divf %88, %89 : vector<16x32xf32>
    %91 = arith.mulf %85, %90 : vector<16x32xf32>
    %c1_51 = arith.constant 1 : index
    %c0_52 = arith.constant 0 : index
    %c0_53 = arith.constant 0 : index
    %92 = vector.load %arg6[%c1_51, %c0_52, %c0_53] : memref<3x32x32xf32, #tpu.memory_space<vmem>>, vector<1x32x32xf32>
    %93 = vector.shape_cast %92 : vector<1x32x32xf32> to vector<32x32xf32>
    %cst_54 = arith.constant dense<0.000000e+00> : vector<16x32xf32>
    %94 = tpu.matmul %91, %93, %cst_54 {dimension_numbers = #tpu.dot_dimension_numbers<[1], [0], [0], [1], [0, 0, 1, 1], [], []>} : vector<16x32xf32>, vector<32x32xf32>, vector<16x32xf32> -> vector<16x32xf32>
    %c1_55 = arith.constant 1 : index
    %c0_56 = arith.constant 0 : index
    %c0_57 = arith.constant 0 : index
    %95 = vector.load %arg7[%c1_55, %c0_56, %c0_57] : memref<3x1x32xf32, #tpu.memory_space<vmem>>, vector<1x1x32xf32>
    %96 = vector.shape_cast %95 : vector<1x1x32xf32> to vector<1x32xf32>
    %97 = vector.broadcast %96 : vector<1x32xf32> to vector<16x32xf32>
    %98 = arith.addf %94, %97 : vector<16x32xf32>
    %99 = arith.negf %98 : vector<16x32xf32>
    %100 = math.exp %99 : vector<16x32xf32>
    %cst_58 = arith.constant 1.000000e+00 : f32
    %101 = vector.broadcast %cst_58 : f32 to vector<16x32xf32>
    %102 = arith.addf %101, %100 : vector<16x32xf32>
    %103 = arith.divf %101, %102 : vector<16x32xf32>
    %104 = arith.mulf %98, %103 : vector<16x32xf32>
    %cst_59 = arith.constant dense<0.000000e+00> : vector<8x32xf32>
    %105 = tpu.matmul %12, %104, %cst_59 {dimension_numbers = #tpu.dot_dimension_numbers<[0], [0], [1], [1], [0, 1, 1, 1], [], []>} : vector<16x8xf32>, vector<16x32xf32>, vector<8x32xf32> -> vector<8x32xf32>
    %c1_60 = arith.constant 1 : index
    %c0_61 = arith.constant 0 : index
    %c0_62 = arith.constant 0 : index
    %106 = vector.load %arg8[%c1_60, %c0_61, %c0_62] : memref<3x64x32xf32, #tpu.memory_space<vmem>>, vector<1x64x32xf32>
    %107 = vector.shape_cast %106 : vector<1x64x32xf32> to vector<64x32xf32>
    %108 = vector.extract_strided_slice %107 {offsets = [0, 0], sizes = [32, 32], strides = [1, 1]} : vector<64x32xf32> to vector<32x32xf32>
    %cst_63 = arith.constant dense<0.000000e+00> : vector<8x32xf32>
    %109 = tpu.matmul %71, %108, %cst_63 {dimension_numbers = #tpu.dot_dimension_numbers<[1], [0], [0], [1], [0, 0, 1, 1], [], []>} : vector<8x32xf32>, vector<32x32xf32>, vector<8x32xf32> -> vector<8x32xf32>
    %110 = vector.extract_strided_slice %107 {offsets = [32, 0], sizes = [32, 32], strides = [1, 1]} : vector<64x32xf32> to vector<32x32xf32>
    %cst_64 = arith.constant dense<0.000000e+00> : vector<8x32xf32>
    %111 = tpu.matmul %105, %110, %cst_64 {dimension_numbers = #tpu.dot_dimension_numbers<[1], [0], [0], [1], [0, 0, 1, 1], [], []>} : vector<8x32xf32>, vector<32x32xf32>, vector<8x32xf32> -> vector<8x32xf32>
    %112 = arith.addf %109, %111 : vector<8x32xf32>
    %c1_65 = arith.constant 1 : index
    %c0_66 = arith.constant 0 : index
    %c0_67 = arith.constant 0 : index
    %113 = vector.load %arg9[%c1_65, %c0_66, %c0_67] : memref<3x1x32xf32, #tpu.memory_space<vmem>>, vector<1x1x32xf32>
    %114 = vector.shape_cast %113 : vector<1x1x32xf32> to vector<1x32xf32>
    %115 = vector.broadcast %114 : vector<1x32xf32> to vector<8x32xf32>
    %116 = arith.addf %112, %115 : vector<8x32xf32>
    %117 = arith.negf %116 : vector<8x32xf32>
    %118 = math.exp %117 : vector<8x32xf32>
    %cst_68 = arith.constant 1.000000e+00 : f32
    %119 = vector.broadcast %cst_68 : f32 to vector<8x32xf32>
    %120 = arith.addf %119, %118 : vector<8x32xf32>
    %121 = arith.divf %119, %120 : vector<8x32xf32>
    %122 = arith.mulf %116, %121 : vector<8x32xf32>
    %c1_69 = arith.constant 1 : index
    %c0_70 = arith.constant 0 : index
    %c0_71 = arith.constant 0 : index
    %123 = vector.load %arg10[%c1_69, %c0_70, %c0_71] : memref<3x32x32xf32, #tpu.memory_space<vmem>>, vector<1x32x32xf32>
    %124 = vector.shape_cast %123 : vector<1x32x32xf32> to vector<32x32xf32>
    %cst_72 = arith.constant dense<0.000000e+00> : vector<8x32xf32>
    %125 = tpu.matmul %122, %124, %cst_72 {dimension_numbers = #tpu.dot_dimension_numbers<[1], [0], [0], [1], [0, 0, 1, 1], [], []>} : vector<8x32xf32>, vector<32x32xf32>, vector<8x32xf32> -> vector<8x32xf32>
    %c1_73 = arith.constant 1 : index
    %c0_74 = arith.constant 0 : index
    %c0_75 = arith.constant 0 : index
    %126 = vector.load %arg11[%c1_73, %c0_74, %c0_75] : memref<3x1x32xf32, #tpu.memory_space<vmem>>, vector<1x1x32xf32>
    %127 = vector.shape_cast %126 : vector<1x1x32xf32> to vector<1x32xf32>
    %128 = vector.broadcast %127 : vector<1x32xf32> to vector<8x32xf32>
    %129 = arith.addf %125, %128 : vector<8x32xf32>
    %130 = arith.addf %71, %129 : vector<8x32xf32>
    %cst_76 = arith.constant dense<0.000000e+00> : vector<32x32xf32>
    %131 = tpu.matmul %11, %130, %cst_76 {dimension_numbers = #tpu.dot_dimension_numbers<[1], [0], [0], [1], [0, 0, 1, 1], [], []>} : vector<32x8xf32>, vector<8x32xf32>, vector<32x32xf32> -> vector<32x32xf32>
    %132 = vector.extract_strided_slice %131 {offsets = [0, 0], sizes = [16, 32], strides = [1, 1]} : vector<32x32xf32> to vector<16x32xf32>
    %133 = vector.extract_strided_slice %131 {offsets = [16, 0], sizes = [16, 32], strides = [1, 1]} : vector<32x32xf32> to vector<16x32xf32>
    %c2 = arith.constant 2 : index
    %c0_77 = arith.constant 0 : index
    %c0_78 = arith.constant 0 : index
    %134 = vector.load %arg4[%c2, %c0_77, %c0_78] : memref<3x64x32xf32, #tpu.memory_space<vmem>>, vector<1x64x32xf32>
    %135 = vector.shape_cast %134 : vector<1x64x32xf32> to vector<64x32xf32>
    %136 = vector.extract_strided_slice %135 {offsets = [0, 0], sizes = [32, 32], strides = [1, 1]} : vector<64x32xf32> to vector<32x32xf32>
    %cst_79 = arith.constant dense<0.000000e+00> : vector<16x32xf32>
    %137 = tpu.matmul %132, %136, %cst_79 {dimension_numbers = #tpu.dot_dimension_numbers<[1], [0], [0], [1], [0, 0, 1, 1], [], []>} : vector<16x32xf32>, vector<32x32xf32>, vector<16x32xf32> -> vector<16x32xf32>
    %138 = vector.extract_strided_slice %135 {offsets = [32, 0], sizes = [32, 32], strides = [1, 1]} : vector<64x32xf32> to vector<32x32xf32>
    %cst_80 = arith.constant dense<0.000000e+00> : vector<16x32xf32>
    %139 = tpu.matmul %133, %138, %cst_80 {dimension_numbers = #tpu.dot_dimension_numbers<[1], [0], [0], [1], [0, 0, 1, 1], [], []>} : vector<16x32xf32>, vector<32x32xf32>, vector<16x32xf32> -> vector<16x32xf32>
    %140 = arith.addf %137, %139 : vector<16x32xf32>
    %c2_81 = arith.constant 2 : index
    %c0_82 = arith.constant 0 : index
    %c0_83 = arith.constant 0 : index
    %141 = vector.load %arg5[%c2_81, %c0_82, %c0_83] : memref<3x1x32xf32, #tpu.memory_space<vmem>>, vector<1x1x32xf32>
    %142 = vector.shape_cast %141 : vector<1x1x32xf32> to vector<1x32xf32>
    %143 = vector.broadcast %142 : vector<1x32xf32> to vector<16x32xf32>
    %144 = arith.addf %140, %143 : vector<16x32xf32>
    %145 = arith.negf %144 : vector<16x32xf32>
    %146 = math.exp %145 : vector<16x32xf32>
    %cst_84 = arith.constant 1.000000e+00 : f32
    %147 = vector.broadcast %cst_84 : f32 to vector<16x32xf32>
    %148 = arith.addf %147, %146 : vector<16x32xf32>
    %149 = arith.divf %147, %148 : vector<16x32xf32>
    %150 = arith.mulf %144, %149 : vector<16x32xf32>
    %c2_85 = arith.constant 2 : index
    %c0_86 = arith.constant 0 : index
    %c0_87 = arith.constant 0 : index
    %151 = vector.load %arg6[%c2_85, %c0_86, %c0_87] : memref<3x32x32xf32, #tpu.memory_space<vmem>>, vector<1x32x32xf32>
    %152 = vector.shape_cast %151 : vector<1x32x32xf32> to vector<32x32xf32>
    %cst_88 = arith.constant dense<0.000000e+00> : vector<16x32xf32>
    %153 = tpu.matmul %150, %152, %cst_88 {dimension_numbers = #tpu.dot_dimension_numbers<[1], [0], [0], [1], [0, 0, 1, 1], [], []>} : vector<16x32xf32>, vector<32x32xf32>, vector<16x32xf32> -> vector<16x32xf32>
    %c2_89 = arith.constant 2 : index
    %c0_90 = arith.constant 0 : index
    %c0_91 = arith.constant 0 : index
    %154 = vector.load %arg7[%c2_89, %c0_90, %c0_91] : memref<3x1x32xf32, #tpu.memory_space<vmem>>, vector<1x1x32xf32>
    %155 = vector.shape_cast %154 : vector<1x1x32xf32> to vector<1x32xf32>
    %156 = vector.broadcast %155 : vector<1x32xf32> to vector<16x32xf32>
    %157 = arith.addf %153, %156 : vector<16x32xf32>
    %158 = arith.negf %157 : vector<16x32xf32>
    %159 = math.exp %158 : vector<16x32xf32>
    %cst_92 = arith.constant 1.000000e+00 : f32
    %160 = vector.broadcast %cst_92 : f32 to vector<16x32xf32>
    %161 = arith.addf %160, %159 : vector<16x32xf32>
    %162 = arith.divf %160, %161 : vector<16x32xf32>
    %163 = arith.mulf %157, %162 : vector<16x32xf32>
    %cst_93 = arith.constant dense<0.000000e+00> : vector<8x32xf32>
    %164 = tpu.matmul %12, %163, %cst_93 {dimension_numbers = #tpu.dot_dimension_numbers<[0], [0], [1], [1], [0, 1, 1, 1], [], []>} : vector<16x8xf32>, vector<16x32xf32>, vector<8x32xf32> -> vector<8x32xf32>
    %c2_94 = arith.constant 2 : index
    %c0_95 = arith.constant 0 : index
    %c0_96 = arith.constant 0 : index
    %165 = vector.load %arg8[%c2_94, %c0_95, %c0_96] : memref<3x64x32xf32, #tpu.memory_space<vmem>>, vector<1x64x32xf32>
    %166 = vector.shape_cast %165 : vector<1x64x32xf32> to vector<64x32xf32>
    %167 = vector.extract_strided_slice %166 {offsets = [0, 0], sizes = [32, 32], strides = [1, 1]} : vector<64x32xf32> to vector<32x32xf32>
    %cst_97 = arith.constant dense<0.000000e+00> : vector<8x32xf32>
    %168 = tpu.matmul %130, %167, %cst_97 {dimension_numbers = #tpu.dot_dimension_numbers<[1], [0], [0], [1], [0, 0, 1, 1], [], []>} : vector<8x32xf32>, vector<32x32xf32>, vector<8x32xf32> -> vector<8x32xf32>
    %169 = vector.extract_strided_slice %166 {offsets = [32, 0], sizes = [32, 32], strides = [1, 1]} : vector<64x32xf32> to vector<32x32xf32>
    %cst_98 = arith.constant dense<0.000000e+00> : vector<8x32xf32>
    %170 = tpu.matmul %164, %169, %cst_98 {dimension_numbers = #tpu.dot_dimension_numbers<[1], [0], [0], [1], [0, 0, 1, 1], [], []>} : vector<8x32xf32>, vector<32x32xf32>, vector<8x32xf32> -> vector<8x32xf32>
    %171 = arith.addf %168, %170 : vector<8x32xf32>
    %c2_99 = arith.constant 2 : index
    %c0_100 = arith.constant 0 : index
    %c0_101 = arith.constant 0 : index
    %172 = vector.load %arg9[%c2_99, %c0_100, %c0_101] : memref<3x1x32xf32, #tpu.memory_space<vmem>>, vector<1x1x32xf32>
    %173 = vector.shape_cast %172 : vector<1x1x32xf32> to vector<1x32xf32>
    %174 = vector.broadcast %173 : vector<1x32xf32> to vector<8x32xf32>
    %175 = arith.addf %171, %174 : vector<8x32xf32>
    %176 = arith.negf %175 : vector<8x32xf32>
    %177 = math.exp %176 : vector<8x32xf32>
    %cst_102 = arith.constant 1.000000e+00 : f32
    %178 = vector.broadcast %cst_102 : f32 to vector<8x32xf32>
    %179 = arith.addf %178, %177 : vector<8x32xf32>
    %180 = arith.divf %178, %179 : vector<8x32xf32>
    %181 = arith.mulf %175, %180 : vector<8x32xf32>
    %c2_103 = arith.constant 2 : index
    %c0_104 = arith.constant 0 : index
    %c0_105 = arith.constant 0 : index
    %182 = vector.load %arg10[%c2_103, %c0_104, %c0_105] : memref<3x32x32xf32, #tpu.memory_space<vmem>>, vector<1x32x32xf32>
    %183 = vector.shape_cast %182 : vector<1x32x32xf32> to vector<32x32xf32>
    %cst_106 = arith.constant dense<0.000000e+00> : vector<8x32xf32>
    %184 = tpu.matmul %181, %183, %cst_106 {dimension_numbers = #tpu.dot_dimension_numbers<[1], [0], [0], [1], [0, 0, 1, 1], [], []>} : vector<8x32xf32>, vector<32x32xf32>, vector<8x32xf32> -> vector<8x32xf32>
    %c2_107 = arith.constant 2 : index
    %c0_108 = arith.constant 0 : index
    %c0_109 = arith.constant 0 : index
    %185 = vector.load %arg11[%c2_107, %c0_108, %c0_109] : memref<3x1x32xf32, #tpu.memory_space<vmem>>, vector<1x1x32xf32>
    %186 = vector.shape_cast %185 : vector<1x1x32xf32> to vector<1x32xf32>
    %187 = vector.broadcast %186 : vector<1x32xf32> to vector<8x32xf32>
    %188 = arith.addf %184, %187 : vector<8x32xf32>
    %189 = arith.addf %130, %188 : vector<8x32xf32>
    %c0_110 = arith.constant 0 : index
    %c0_111 = arith.constant 0 : index
    %190 = vector.load %arg12[%c0_110, %c0_111] : memref<32x8xf32, #tpu.memory_space<vmem>>, vector<32x8xf32>
    %cst_112 = arith.constant dense<0.000000e+00> : vector<8x8xf32>
    %191 = tpu.matmul %189, %190, %cst_112 {dimension_numbers = #tpu.dot_dimension_numbers<[1], [0], [0], [1], [0, 0, 1, 1], [], []>} : vector<8x32xf32>, vector<32x8xf32>, vector<8x8xf32> -> vector<8x8xf32>
    %c0_113 = arith.constant 0 : index
    %c0_114 = arith.constant 0 : index
    %192 = vector.load %arg13[%c0_113, %c0_114] : memref<1x8xf32, #tpu.memory_space<vmem>>, vector<1x8xf32>
    %193 = vector.broadcast %192 : vector<1x8xf32> to vector<8x8xf32>
    %194 = arith.addf %191, %193 : vector<8x8xf32>
    %c0_115 = arith.constant 0 : index
    %c0_116 = arith.constant 0 : index
    %195 = vector.load %arg14[%c0_115, %c0_116] : memref<8x8xf32, #tpu.memory_space<vmem>>, vector<8x8xf32>
    tpu.vector_store %arg14[%c0_115, %c0_116], %194 {strides = array<i32>} : memref<8x8xf32, #tpu.memory_space<vmem>>, vector<8x8xf32>,
    return
  }
}

</mosaic_0001>

<bundles_post_ra>
// kernel: tpu_custom_call.1
= control target key start
LH: loop header
LB: loop body
LE: loop exit
PB: predicated region body
PF: predicated region fallthrough
CT: control target
= control target key end

     0   :  { %vm57_vm0 = vcmask 64512   ;;  %v3209_v2 = vmov 0.0   ;;  %vm3210_vm1 = vmmov 0   ;;  %v3211_v4 = vmov 0   ;;  %s3744_s0 = inlined_call_operand.vmem [shape: s32[32,1], index: 0, kind: input, shape index: {}]   ;;  %s3745_s1 = inlined_call_operand.vmem [shape: f32[8,8], index: 1, kind: input, shape index: {}]   ;;  %s3746_s2 = inlined_call_operand.vmem [shape: f32[8,32], index: 2, kind: input, shape index: {}]   ;;  %s3747_s3 = inlined_call_operand.vmem [shape: f32[1,32], index: 3, kind: input, shape index: {}]   ;;  %s3748_s4 = inlined_call_operand.vmem [shape: f32[3,64,32], index: 4, kind: input, shape index: {}]   ;;  %s3749_s5 = inlined_call_operand.vmem [shape: f32[3,1,32], index: 5, kind: input, shape index: {}]   ;;  %s3750_s6 = inlined_call_operand.vmem [shape: f32[3,32,32], index: 6, kind: input, shape index: {}]   ;;  %s3751_s7 = inlined_call_operand.vmem [shape: f32[3,1,32], index: 7, kind: input, shape index: {}]   ;;  %s3752_s8 = inlined_call_operand.vmem [shape: f32[3,64,32], index: 8, kind: input, shape index: {}]   ;;  %s3753_s9 = inlined_call_operand.vmem [shape: f32[3,1,32], index: 9, kind: input, shape index: {}]   ;;  %s3754_s10 = inlined_call_operand.vmem [shape: f32[3,32,32], index: 10, kind: input, shape index: {}]   ;;  %s3755_s11 = inlined_call_operand.vmem [shape: f32[3,1,32], index: 11, kind: input, shape index: {}]   ;;  %s3756_s12 = inlined_call_operand.vmem [shape: f32[32,8], index: 12, kind: input, shape index: {}]   ;;  %s3757_s13 = inlined_call_operand.vmem [shape: f32[1,8], index: 13, kind: input, shape index: {}]   ;;  %s3758_s14 = inlined_call_operand.hbm [shape: f32[8,8], index: 14, kind: output, shape index: {}]  }
   0x1   :  { %v49_v0 = vld [vmem:[%s3746_s2] sm:$0xff]  ;;  %2712 = vmatprep.subr.mxu0 %v3209_v2  ;;  %2714 = vmatprep.mubr.msk.f32.mxu0 %vm3210_vm1, %v3209_v2  ;;  %v133_v5 = vld [vmem:[%s3744_s0 + $0x10] sm:$0xff] }
   0x2   :  { %v48_v1 = vld [vmem:[%s3745_s1] sm:$0xff]  ;;  %2713 = vmatpush3.msra.mxu0 %v49_v0  ;;  %3123 = vset.pattern.permute.xlu0 %v3211_v4 }
   0x3   :  { %v131_v3 = vld [vmem:[%s3744_s0] sm:$0xff] }
   0x4   :  { %19 = vsyncpa [#allocation3], 0  ;;  %2715 = vmatmul.mubr.msk.f32.vlgmr.msra.gmra.mrb[0].mxu0 %vm57_vm0, %v48_v1  ;;  %138 = vperm.xlu0 %3123, %v131_v3   ;;  %v132_v6 = vld [vmem:[%s3744_s0 + $0x8] sm:$0xff]  ;;  %v134_v7 = vld [vmem:[%s3744_s0 + $0x18] sm:$0xff]  ;;  %v135_v11 = vlaneseq  ;;  %vm266_vm6 = vcmask 261120   ;;  %v3212_v41 = vmov 0.0|0.0  }
   0x5   :  { %3124 = vset.pattern.permute.xlu1 %v3211_v4  ;;  %v262_v8 = vld [vmem:[%s3748_s4 + $0x20] sm:$0xff]  ;;  %v263_v9 = vld [vmem:[%s3748_s4 + $0x28] sm:$0xff]  ;;  %v264_v25 = vld [vmem:[%s3748_s4 + $0x30] sm:$0xff]  ;;  %vm590_vm7 = vcmask 130048   ;;  %s3213_s30 = smov [#allocation2]  }
   0x6   :  { %144 = vperm.xlu1 %3124, %v133_v5   ;;  %v2971_v10 = vpack.c.bf16 %v263_v9, %v262_v8  ;;  %v136_v12 = vand.u32 127, %v135_v11  ;;  %v2449_v18 = vld [vmem:[%s3747_s3] ss:$0 sm:$0xff]  ;;  %v265_v26 = vld [vmem:[%s3748_s4 + $0x38] sm:$0xff]  ;;  %v259_v29 = vld [vmem:[%s3748_s4 + $0x8] sm:$0xff]  ;;  %s2441_s15 = sshll.u32 %s3213_s30, 4  ;;  %s2442_s15 = int_to_ptr.vmem [resolvable:$true] %s2441_s15 }
   0x7   :  { %v2975_v27 = vpack.c.bf16 %v265_v26, %v264_v25  ;;  %v258_v28 = vld [vmem:[%s3748_s4] sm:$0xff]  ;;  %v260_v33 = vld [vmem:[%s3748_s4 + $0x10] sm:$0xff]  ;;  %v261_v34 = vld [vmem:[%s3748_s4 + $0x18] sm:$0xff]  ;;  %p3190_p1 = scmp.lt.s32.totalorder %s2442_s15, %s2442_s15 }
   0x8   :  { %141 = vperm.xlu0 %3123, %v132_v6   ;;  %2972 = vmatprep.subr.bf16.mxu0 %v2971_v10  ;;  %v2979_v30 = vpack.c.bf16 %v259_v29, %v258_v28  ;;  %v2983_v37 = vpack.c.bf16 %v261_v34, %v260_v33  ;;  %v664_v38 = vld [vmem:[%s3752_s8] sm:$0xff]  ;;  %v665_v39 = vld [vmem:[%s3752_s8 + $0x8] sm:$0xff]  ;;  %v666_v42 = vld [vmem:[%s3752_s8 + $0x10] sm:$0xff] }
   0x9   :  { %2974 = vmatpush3.bf16.msra.mxu0 %v2971_v10  ;;  %v3005_v40 = vpack.c.bf16 %v665_v39, %v664_v38  ;;  %v667_v43 = vld [vmem:[%s3752_s8 + $0x18] sm:$0xff]  ;;  %v452_v45 = vld [vmem:[%s3750_s6] sm:$0xff]  ;;  %v453_v46 = vld [vmem:[%s3750_s6 + $0x8] sm:$0xff] }
   0xa   :  { %147 = vperm.xlu1 %3124, %v134_v7   ;;  %2976 = vmatprep.subr.bf16.mxu0 %v2975_v27  ;;  %v3008_v44 = vpack.c.bf16 %v667_v43, %v666_v42  ;;  %v2987_v47 = vpack.c.bf16 %v453_v46, %v452_v45  ;;  %v454_v48 = vld [vmem:[%s3750_s6 + $0x10] sm:$0xff]  ;;  %v455_v49 = vld [vmem:[%s3750_s6 + $0x18] sm:$0xff]  ;;  %v2463_v51 = vld [vmem:[%s3749_s5] ss:$0 sm:$0xff] }
   0xb   :  { %v2991_v50 = vpack.c.bf16 %v455_v49, %v454_v48  ;;  %v2466_v5 = vld [vmem:[%s3751_s7] ss:$0 sm:$0xff]  ;;  %v669_v26 = vld [vmem:[%s3752_s8 + $0x28] sm:$0xff]  ;;  %v835_v38 = vld [vmem:[%s3754_s10 + $0x10] sm:$0xff] }
   0xc   :  { %v668_v25 = vld [vmem:[%s3752_s8 + $0x20] sm:$0xff]  ;;  %v836_v39 = vld [vmem:[%s3754_s10 + $0x18] sm:$0xff] }
   0xd   :  { %2978 = vmatpush3.bf16.msra.mxu0 %v2975_v27  ;;  %v2999_v29 = vpack.c.bf16 %v669_v26, %v668_v25  ;;  %v2474_v43 = vld [vmem:[%s3753_s9] ss:$0 sm:$0xff]  ;;  %v2495_v25 = vld [vmem:[%s3749_s5 + $0x1] ss:$0 sm:$0xff] }
   0xe   :  { %2980 = vmatprep.subr.bf16.mxu0 %v2979_v30 }
  0x83   :  { %v139_v13 = vpop.permute.xlu0 %138 }
  0x84   :  { %vm149_vm2 = vcmp.eq.s32.totalorder %v136_v12, %v139_v13 }
  0x85   :  { %v3318_v14 = vsel %vm149_vm2, 1.0, %v3209_v2  ;;  %v145_v17 = vpop.permute.xlu1 %144 }
  0x86   :  { %558 = vxpose.xlu0.b32.start [1/2] (short) (narrow) %v3318_v14, 8  ;;  %2719 = vmatprep.mubr.msk.f32.mxu1 %vm57_vm0, %v3318_v14  ;;  %vm151_vm4 = vcmp.eq.s32.totalorder %v136_v12, %v145_v17 }
  0x87   :  { %v142_v15 = vpop.permute.xlu0 %141  ;;  %v3333_v23 = vsel %vm151_vm4, 1.0, %v3209_v2 }
  0x88   :  { %vm150_vm3 = vcmp.eq.s32.totalorder %v136_v12, %v142_v15 }
  0x89   :  { %v3324_v16 = vsel %vm150_vm3, 1.0, %v3209_v2  ;;  %v148_v22 = vpop.permute.xlu1 %147 }
  0x8a   :  { %559 = vxpose.xlu0.b32.end [2/2] (short) (narrow) %v3324_v16, 8  ;;  %vm152_vm5 = vcmp.eq.s32.totalorder %v136_v12, %v148_v22 }
  0x8b   :  { %v3342_v24 = vsel %vm152_vm5, 1.0, %v3209_v2 }
  0xd7   :  { %v127_v19 = vpop.f32.mrb[0].mxu0 }
  0xd8   :  { %v3330_v20 = vadd.f32 %v2449_v18, %v127_v19  ;;  %v2716_v21 = vpop.f32.mrb[1].mxu0 }
  0xda   :  { %2717 = vmatprep.subr.mxu1 %v3330_v20 }
  0xdb   :  { %2718 = vmatpush3.msra.mxu1 %v3330_v20 }
  0xdc   :  { %2720 = vmatmul.mubr.msk.f32.vlgmr.msra.gmra.mrb[0].mxu1 %vm57_vm0, %v3324_v16  ;;  %2988 = vmatprep.subr.bf16.mxu1 %v2987_v47 }
  0xdd   :  { %2722 = vmatprep.mubr.msk.f32.mxu1 %vm57_vm0, %v3333_v23  ;;  %2990 = vmatpush3.bf16.msra.mxu1 %v2987_v47 }
  0xde   :  { %2992 = vmatprep.subr.bf16.mxu1 %v2991_v50 }
  0xe0   :  { %2723 = vmatmul.mubr.msk.f32.gmra.mrb[2].mxu1 %vm57_vm0, %v3342_v24 }
  0xe1   :  { %2994 = vmatpush3.bf16.msra.mxu1 %v2991_v50 }
  0xe2   :  { %2995 = vmatprep.subr.bf16.mxu1 %v3212_v41 }
 0x106   :  { %v3419_v28 = vpop.trf.xlu0 }
 0x1af   :  { %v2721_v31 = vpop.f32.mrb[0].mxu1 }
 0x1b0   :  { %v239_v32 = vpop.f32.mrb[1].mxu1 }
 0x1b3   :  { %v2724_v35 = vpop.f32.mrb[2].mxu1 }
 0x1b4   :  { %v249_v36 = vpop.f32.mrb[3].mxu1 }
 0x1b5   :  { %2733 = vmatprep.mubr.msk.f32.mxu0 %vm266_vm6, %v249_v36  ;;  %v834_v36 = vld [vmem:[%s3754_s10 + $0x8] sm:$0xff] }
 0x1b6   :  { %2734 = vmatmul.mubr.msk.f32.vlgmr.msra.gmra.mrb[2].mxu0 %vm266_vm6, %v2724_v35  ;;  %v833_v35 = vld [vmem:[%s3754_s10] sm:$0xff] }
 0x1b7   :  { %2982 = vmatpush3.bf16.msra.mxu0 %v2979_v30  ;;  %2744 = vmatprep.mubr.msk.f32.mxu0 %vm266_vm6, %v239_v32  ;;  %v670_v30 = vld [vmem:[%s3752_s8 + $0x30] sm:$0xff] }
 0x1b8   :  { %2984 = vmatprep.subr.bf16.mxu0 %v2983_v37 }
 0x1bb   :  { %2986 = vmatpush3.bf16.msra.mxu0 %v2983_v37  ;;  %v3011_v37 = vpack.c.bf16 %v834_v36, %v833_v35 }
 0x1bc   :  { %3004 = vmatprep.subr.bf16.mxu0 %v3212_v41 }
 0x1be   :  { %2745 = vmatmul.mubr.msk.f32.vlgmr.msra.gmra.mrb[2].mxu0 %vm266_vm6, %v2721_v31  ;;  %v671_v31 = vld [vmem:[%s3752_s8 + $0x38] sm:$0xff] }
 0x1bf   :  { %3006 = vmatpush3.bf16.msra.mxu0 %v3005_v40  ;;  %2784 = vmatprep.mubr.msk.f32.mxu0 %vm3210_vm1, %v3209_v2  ;;  %v3002_v32 = vpack.c.bf16 %v671_v31, %v670_v30  ;;  %v3014_v40 = vpack.c.bf16 %v836_v39, %v835_v38 }
 0x1c0   :  { %3007 = vmatprep.subr.bf16.mxu0 %v3212_v41 }
 0x1c3   :  { %3009 = vmatpush3.bf16.msra.mxu0 %v3008_v44 }
 0x1c6   :  { %2785 = vmatmul.mubr.msk.f32.vlgmr.msra.gmra.mrb[4].mxu0 %vm266_vm6, %v3330_v20 }
 0x1c7   :  { %2800 = vmatprep.mubr.msk.f32.mxu0 %vm57_vm0, %v3318_v14 }
 0x291   :  { %v2746_v52 = vpop.f32.mrb[2].mxu0 }
 0x292   :  { %v437_v53 = vadd.f32 %v2746_v52, %v2463_v51  ;;  %v420_v54 = vpop.f32.mrb[3].mxu0  ;;  %v2476_v52 = vld [vmem:[%s3755_s11] ss:$0 sm:$0xff] }
 0x293   :  { %v436_v55 = vadd.f32 %v2463_v51, %v420_v54  ;;  %v2486_v54 = vld [vmem:[%s3748_s4 + $0x60] sm:$0xff] }
 0x294   :  { %v2465_v56 = vmul.f32 -1.442695, %v437_v53 }
 0x295   :  { %v2464_v57 = vmul.f32 -1.442695, %v436_v55 }
 0x296   :  { %3125 = vpow2.f32 %v2465_v56 }
 0x297   :  { %3127 = vpow2.f32 %v2464_v57 }
 0x299   :  { %v3404_v58 = vpop.f32.mrb[4].mxu0 }
 0x29a   :  { %v2786_v59 = vpop.f32.mrb[5].mxu0 }
 0x2a0   :  { %v3126_v60 = vpop.eup %3125 }
 0x2a1   :  { %v3128_v61 = vpop.eup %3127  ;;  %v445_v62 = vadd.f32 1.0, %v3126_v60  ;;  %v2489_v60 = vld [vmem:[%s3748_s4 + $0x78] sm:$0xff] }
 0x2a2   :  { %v444_v63 = vadd.f32 1.0, %v3128_v61 }
 0x2a3   :  { %3129 = vrcp.f32 %v445_v62  ;;  %v2482_v62 = vld [vmem:[%s3748_s4 + $0x40] sm:$0xff] }
 0x2a4   :  { %3131 = vrcp.f32 %v444_v63  ;;  %v2483_v63 = vld [vmem:[%s3748_s4 + $0x48] sm:$0xff] }
 0x2ad   :  { %v3130_v0 = vpop.eup %3129 }
 0x2ae   :  { %v3132_v1 = vpop.eup %3131  ;;  %v451_v4 = vmul.f32 %v3130_v0, %v437_v53  ;;  %v3024_v0 = vpack.c.bf16 %v2483_v63, %v2482_v62  ;;  %v2515_v63 = vld [vmem:[%s3752_s8 + $0x70] sm:$0xff] }
 0x2af   :  { %v450_v3 = vmul.f32 %v3132_v1, %v436_v55  ;;  %v2487_v55 = vld [vmem:[%s3748_s4 + $0x68] sm:$0xff] }
 0x2b0   :  { %v3016_v59 = vpack.c.bf16 %v2487_v55, %v2486_v54 }
 0x2b1   :  { %2755 = vmatprep.mubr.msk.f32.mxu1 %vm266_vm6, %v450_v3 }
 0x2b2   :  { %2756 = vmatmul.mubr.msk.f32.vlgmr.msra.gmra.mrb[4].mxu1 %vm266_vm6, %v451_v4  ;;  %v2484_v4 = vld [vmem:[%s3748_s4 + $0x50] sm:$0xff] }
 0x2b3   :  { %2762 = vmatprep.mubr.msk.f32.mxu1 %vm3210_vm1, %v3209_v2 }
 0x385   :  { %v2757_v6 = vpop.f32.mrb[4].mxu1 }
 0x386   :  { %v541_v7 = vadd.f32 %v2757_v6, %v2466_v5  ;;  %v535_v8 = vpop.f32.mrb[5].mxu1 }
 0x387   :  { %v536_v9 = vadd.f32 %v2466_v5, %v535_v8  ;;  %v2485_v5 = vld [vmem:[%s3748_s4 + $0x58] sm:$0xff] }
 0x388   :  { %v2470_v10 = vmul.f32 -1.442695, %v541_v7  ;;  %v3028_v8 = vpack.c.bf16 %v2485_v5, %v2484_v4  ;;  %v2522_v5 = vld [vmem:[%s3754_s10 + $0x20] sm:$0xff] }
 0x389   :  { %v2469_v11 = vmul.f32 -1.442695, %v536_v9 }
 0x38a   :  { %3133 = vpow2.f32 %v2470_v10  ;;  %v2510_v10 = vld [vmem:[%s3752_s8 + $0x48] sm:$0xff] }
 0x38b   :  { %3135 = vpow2.f32 %v2469_v11 }
 0x394   :  { %v3134_v12 = vpop.eup %3133 }
 0x395   :  { %v3136_v13 = vpop.eup %3135  ;;  %v551_v15 = vadd.f32 1.0, %v3134_v12  ;;  %v2511_v12 = vld [vmem:[%s3752_s8 + $0x50] sm:$0xff] }
 0x396   :  { %v550_v17 = vadd.f32 1.0, %v3136_v13  ;;  %v2512_v13 = vld [vmem:[%s3752_s8 + $0x58] sm:$0xff] }
 0x397   :  { %3137 = vrcp.f32 %v551_v15  ;;  %v3053_v15 = vpack.c.bf16 %v2512_v13, %v2511_v12  ;;  %v2520_v12 = vld [vmem:[%s3753_s9 + $0x1] ss:$0 sm:$0xff] }
 0x398   :  { %3139 = vrcp.f32 %v550_v17  ;;  %v2498_v17 = vld [vmem:[%s3750_s6 + $0x20] sm:$0xff] }
 0x3a1   :  { %v3138_v18 = vpop.eup %3137 }
 0x3a2   :  { %v3140_v19 = vpop.eup %3139  ;;  %v557_v21 = vmul.f32 %v3138_v18, %v541_v7  ;;  %v2499_v18 = vld [vmem:[%s3750_s6 + $0x28] sm:$0xff] }
 0x3a3   :  { %v556_v22 = vmul.f32 %v3140_v19, %v536_v9  ;;  %v2509_v9 = vld [vmem:[%s3752_s8 + $0x40] sm:$0xff]  ;;  %v3032_v19 = vpack.c.bf16 %v2499_v18, %v2498_v17 }
 0x3a4   :  { %v3050_v11 = vpack.c.bf16 %v2510_v10, %v2509_v9  ;;  %v2525_v9 = vld [vmem:[%s3754_s10 + $0x38] sm:$0xff] }
 0x3a5   :  { %v2996_v27 = vpack.c.bf16 %v557_v21, %v556_v22  ;;  %v2500_v21 = vld [vmem:[%s3750_s6 + $0x30] sm:$0xff]  ;;  %v2501_v22 = vld [vmem:[%s3750_s6 + $0x38] sm:$0xff] }
 0x3a7   :  { %2997 = vmatpush3.bf16.msra.mxu1 %v2996_v27 }
 0x3a8   :  { %2998 = vmatprep.subr.bf16.mxu1 %v3212_v41 }
 0x3aa   :  { %2763 = vmatmul.mubr.msk.f32.vlgmr.msra.gmra.mrb[6].mxu1 %vm590_vm7, %v3419_v28 }
 0x3ab   :  { %3000 = vmatpush3.bf16.msra.mxu1 %v2999_v29  ;;  %2773 = vmatprep.mubr.msk.f32.mxu1 %vm3210_vm1, %v3209_v2 }
 0x3ac   :  { %3001 = vmatprep.subr.bf16.mxu1 %v3212_v41 }
 0x3af   :  { %3003 = vmatpush3.bf16.msra.mxu1 %v3002_v32 }
 0x3b0   :  { %3010 = vmatprep.subr.bf16.mxu1 %v3212_v41 }
 0x47d   :  { %v660_v33 = vpop.f32.mrb[6].mxu1 }
 0x47e   :  { %v2764_v34 = vpop.f32.mrb[7].mxu1  ;;  %2774 = vmatmul.mubr.msk.f32.vlgmr.msra.gmra.mrb[8].mxu1 %vm266_vm6, %v660_v33 }
 0x47f   :  { %2795 = vmatprep.mubr.msk.f32.mxu1 %vm3210_vm1, %v3209_v2  ;;  %3012 = vmatpush3.bf16.msra.mxu1 %v3011_v37 }
 0x480   :  { %3013 = vmatprep.subr.bf16.mxu1 %v3212_v41 }
 0x483   :  { %3015 = vmatpush3.bf16.msra.mxu1 %v3014_v40 }
 0x484   :  { %3033 = vmatprep.subr.bf16.mxu1 %v3032_v19 }
 0x551   :  { %v741_v42 = vpop.f32.mrb[8].mxu1 }
 0x552   :  { %v815_v44 = vadd.f32 %v3404_v58, %v741_v42  ;;  %v2775_v45 = vpop.f32.mrb[9].mxu1 }
 0x554   :  { %v825_v46 = vadd.f32 %v2474_v43, %v815_v44  ;;  %v2503_v44 = vld [vmem:[%s3751_s7 + $0x1] ss:$0 sm:$0xff] }
 0x556   :  { %v2475_v47 = vmul.f32 -1.442695, %v825_v46 }
 0x558   :  { %3141 = vpow2.f32 %v2475_v47 }
 0x562   :  { %v3142_v48 = vpop.eup %3141 }
 0x563   :  { %v829_v49 = vadd.f32 1.0, %v3142_v48 }
 0x565   :  { %3143 = vrcp.f32 %v829_v49 }
 0x56f   :  { %v3144_v50 = vpop.eup %3143 }
 0x570   :  { %v832_v51 = vmul.f32 %v3144_v50, %v825_v46 }
 0x572   :  { %2796 = vmatmul.mubr.msk.f32.vlgmr.msra.gmra.mrb[10].mxu1 %vm266_vm6, %v832_v51 }
 0x573   :  { %3035 = vmatpush3.bf16.msra.mxu1 %v3032_v19 }
 0x645   :  { %v913_v53 = vpop.f32.mrb[10].mxu1 }
 0x646   :  { %v914_v56 = vadd.f32 %v2476_v52, %v913_v53  ;;  %v2797_v57 = vpop.f32.mrb[11].mxu1 }
 0x648   :  { %v3465_v58 = vadd.f32 %v914_v56, %v3330_v20  ;;  %v2488_v20 = vld [vmem:[%s3748_s4 + $0x70] sm:$0xff] }
 0x649   :  { %v3020_v61 = vpack.c.bf16 %v2489_v60, %v2488_v20  ;;  %v2513_v20 = vld [vmem:[%s3752_s8 + $0x60] sm:$0xff]  ;;  %v2514_v60 = vld [vmem:[%s3752_s8 + $0x68] sm:$0xff] }
 0x64a   :  { %2798 = vmatprep.subr.mxu0 %v3465_v58  ;;  %v3044_v62 = vpack.c.bf16 %v2514_v60, %v2513_v20 }
 0x64b   :  { %2799 = vmatpush3.msra.mxu0 %v3465_v58 }
 0x64c   :  { %2801 = vmatmul.mubr.msk.f32.vlgmr.msra.gmra.mrb[6].mxu0 %vm57_vm0, %v3324_v16  ;;  %3017 = vmatprep.subr.bf16.mxu0 %v3016_v59 }
 0x64d   :  { %2803 = vmatprep.mubr.msk.f32.mxu0 %vm57_vm0, %v3333_v23  ;;  %3019 = vmatpush3.bf16.msra.mxu0 %v3016_v59 }
 0x64e   :  { %3021 = vmatprep.subr.bf16.mxu0 %v3020_v61 }
 0x650   :  { %2804 = vmatmul.mubr.msk.f32.gmra.mrb[8].mxu0 %vm57_vm0, %v3342_v24 }
 0x651   :  { %3023 = vmatpush3.bf16.msra.mxu0 %v3020_v61 }
 0x652   :  { %3025 = vmatprep.subr.bf16.mxu0 %v3024_v0 }
 0x71f   :  { %v2802_v1 = vpop.f32.mrb[6].mxu0 }
 0x720   :  { %v984_v3 = vpop.f32.mrb[7].mxu0 }
 0x723   :  { %v2805_v6 = vpop.f32.mrb[8].mxu0 }
 0x724   :  { %v994_v7 = vpop.f32.mrb[9].mxu0 }
 0x725   :  { %2814 = vmatprep.mubr.msk.f32.mxu0 %vm266_vm6, %v994_v7 }
 0x726   :  { %2815 = vmatmul.mubr.msk.f32.vlgmr.msra.gmra.mrb[10].mxu0 %vm266_vm6, %v2805_v6  ;;  %v2523_v6 = vld [vmem:[%s3754_s10 + $0x28] sm:$0xff] }
 0x727   :  { %3027 = vmatpush3.bf16.msra.mxu0 %v3024_v0  ;;  %2825 = vmatprep.mubr.msk.f32.mxu0 %vm266_vm6, %v984_v3  ;;  %v2516_v0 = vld [vmem:[%s3752_s8 + $0x78] sm:$0xff]  ;;  %v3056_v7 = vpack.c.bf16 %v2523_v6, %v2522_v5 }
 0x728   :  { %3029 = vmatprep.subr.bf16.mxu0 %v3028_v8 }
 0x72b   :  { %3031 = vmatpush3.bf16.msra.mxu0 %v3028_v8  ;;  %v2524_v8 = vld [vmem:[%s3754_s10 + $0x30] sm:$0xff] }
 0x72c   :  { %3049 = vmatprep.subr.bf16.mxu0 %v3212_v41  ;;  %v3059_v10 = vpack.c.bf16 %v2525_v9, %v2524_v8 }
 0x72e   :  { %2826 = vmatmul.mubr.msk.f32.vlgmr.msra.gmra.mrb[10].mxu0 %vm266_vm6, %v2802_v1  ;;  %v3047_v1 = vpack.c.bf16 %v2516_v0, %v2515_v63 }
 0x72f   :  { %3051 = vmatpush3.bf16.msra.mxu0 %v3050_v11  ;;  %2865 = vmatprep.mubr.msk.f32.mxu0 %vm3210_vm1, %v3209_v2 }
 0x730   :  { %3052 = vmatprep.subr.bf16.mxu0 %v3212_v41 }
 0x733   :  { %3054 = vmatpush3.bf16.msra.mxu0 %v3053_v15 }
 0x736   :  { %2866 = vmatmul.mubr.msk.f32.vlgmr.msra.gmra.mrb[12].mxu0 %vm266_vm6, %v3465_v58 }
 0x737   :  { %2881 = vmatprep.mubr.msk.f32.mxu0 %vm57_vm0, %v3318_v14  ;;  %v3036_v14 = vpack.c.bf16 %v2501_v22, %v2500_v21 }
 0x739   :  { %3037 = vmatprep.subr.bf16.mxu1 %v3036_v14 }
 0x73a   :  { %3039 = vmatpush3.bf16.msra.mxu1 %v3036_v14 }
 0x73b   :  { %3040 = vmatprep.subr.bf16.mxu1 %v3212_v41 }
 0x801   :  { %v2827_v26 = vpop.f32.mrb[10].mxu0 }
 0x802   :  { %v1183_v27 = vadd.f32 %v2827_v26, %v2495_v25  ;;  %v1165_v29 = vpop.f32.mrb[11].mxu0 }
 0x803   :  { %v1182_v30 = vadd.f32 %v2495_v25, %v1165_v29  ;;  %v2527_v25 = vld [vmem:[%s3755_s11 + $0x1] ss:$0 sm:$0xff]  ;;  %v2538_v29 = vld [vmem:[%s3748_s4 + $0xa8] sm:$0xff] }
 0x804   :  { %v2497_v31 = vmul.f32 -1.442695, %v1183_v27 }
 0x805   :  { %v2496_v32 = vmul.f32 -1.442695, %v1182_v30 }
 0x806   :  { %3145 = vpow2.f32 %v2497_v31 }
 0x807   :  { %3147 = vpow2.f32 %v2496_v32 }
 0x809   :  { %v3533_v33 = vpop.f32.mrb[12].mxu0 }
 0x80a   :  { %v2867_v34 = vpop.f32.mrb[13].mxu0 }
 0x80b   :  { %v2540_v34 = vld [vmem:[%s3748_s4 + $0xb8] sm:$0xff] }
 0x810   :  { %v3146_v35 = vpop.eup %3145 }
 0x811   :  { %v3148_v36 = vpop.eup %3147  ;;  %v1191_v37 = vadd.f32 1.0, %v3146_v35 }
 0x812   :  { %v1190_v38 = vadd.f32 1.0, %v3148_v36 }
 0x813   :  { %3149 = vrcp.f32 %v1191_v37 }
 0x814   :  { %3151 = vrcp.f32 %v1190_v38  ;;  %v2535_v38 = vld [vmem:[%s3748_s4 + $0x90] sm:$0xff] }
 0x81d   :  { %v3150_v39 = vpop.eup %3149 }
 0x81e   :  { %v3152_v40 = vpop.eup %3151  ;;  %v1197_v43 = vmul.f32 %v3150_v39, %v1183_v27  ;;  %v2537_v27 = vld [vmem:[%s3748_s4 + $0xa0] sm:$0xff]  ;;  %v2536_v39 = vld [vmem:[%s3748_s4 + $0x98] sm:$0xff] }
 0x81f   :  { %v1196_v42 = vmul.f32 %v3152_v40, %v1182_v30 }
 0x821   :  { %2836 = vmatprep.mubr.msk.f32.mxu1 %vm266_vm6, %v1196_v42 }
 0x822   :  { %2837 = vmatmul.mubr.msk.f32.vlgmr.msra.gmra.mrb[12].mxu1 %vm266_vm6, %v1197_v43  ;;  %v3073_v43 = vpack.c.bf16 %v2536_v39, %v2535_v38  ;;  %v2575_v38 = vld [vmem:[%s3754_s10 + $0x50] sm:$0xff] }
 0x823   :  { %2843 = vmatprep.mubr.msk.f32.mxu1 %vm3210_vm1, %v3209_v2 }
 0x8f5   :  { %v2838_v45 = vpop.f32.mrb[12].mxu1 }
 0x8f6   :  { %v1289_v46 = vadd.f32 %v2838_v45, %v2503_v44  ;;  %v1283_v47 = vpop.f32.mrb[13].mxu1  ;;  %v2561_v45 = vld [vmem:[%s3752_s8 + $0x88] sm:$0xff] }
 0x8f7   :  { %v1284_v48 = vadd.f32 %v2503_v44, %v1283_v47  ;;  %v2560_v44 = vld [vmem:[%s3752_s8 + $0x80] sm:$0xff]  ;;  %v2562_v47 = vld [vmem:[%s3752_s8 + $0x90] sm:$0xff] }
 0x8f8   :  { %v2507_v49 = vmul.f32 -1.442695, %v1289_v46 }
 0x8f9   :  { %v2506_v50 = vmul.f32 -1.442695, %v1284_v48 }
 0x8fa   :  { %3153 = vpow2.f32 %v2507_v49 }
 0x8fb   :  { %3155 = vpow2.f32 %v2506_v50  ;;  %v2549_v50 = vld [vmem:[%s3750_s6 + $0x40] sm:$0xff] }
 0x904   :  { %v3154_v51 = vpop.eup %3153 }
 0x905   :  { %v3156_v52 = vpop.eup %3155  ;;  %v1299_v53 = vadd.f32 1.0, %v3154_v51  ;;  %v2550_v51 = vld [vmem:[%s3750_s6 + $0x48] sm:$0xff] }
 0x906   :  { %v1298_v54 = vadd.f32 1.0, %v3156_v52  ;;  %v3077_v52 = vpack.c.bf16 %v2550_v51, %v2549_v50 }
 0x907   :  { %3157 = vrcp.f32 %v1299_v53  ;;  %v2551_v53 = vld [vmem:[%s3750_s6 + $0x50] sm:$0xff] }
 0x908   :  { %3159 = vrcp.f32 %v1298_v54  ;;  %v2552_v54 = vld [vmem:[%s3750_s6 + $0x58] sm:$0xff] }
 0x911   :  { %v3158_v55 = vpop.eup %3157 }
 0x912   :  { %v3160_v56 = vpop.eup %3159  ;;  %v1305_v57 = vmul.f32 %v3158_v55, %v1289_v46  ;;  %v3095_v46 = vpack.c.bf16 %v2561_v45, %v2560_v44  ;;  %v3081_v55 = vpack.c.bf16 %v2552_v54, %v2551_v53  ;;  %v2571_v45 = vld [vmem:[%s3753_s9 + $0x2] ss:$0 sm:$0xff]  ;;  %v2353_v54 = vld [vmem:[%s3756_s12 + $0x18] sm:$0xff] }
 0x913   :  { %v1304_v59 = vmul.f32 %v3160_v56, %v1284_v48  ;;  %v2563_v48 = vld [vmem:[%s3752_s8 + $0x98] sm:$0xff]  ;;  %v2546_v56 = vld [vmem:[%s3749_s5 + $0x2] ss:$0 sm:$0xff] }
 0x914   :  { %v3098_v49 = vpack.c.bf16 %v2563_v48, %v2562_v47 }
 0x915   :  { %v3041_v61 = vpack.c.bf16 %v1305_v57, %v1304_v59 }
 0x917   :  { %3042 = vmatpush3.bf16.msra.mxu1 %v3041_v61 }
 0x918   :  { %3043 = vmatprep.subr.bf16.mxu1 %v3212_v41 }
 0x91a   :  { %2844 = vmatmul.mubr.msk.f32.vlgmr.msra.gmra.mrb[14].mxu1 %vm590_vm7, %v3419_v28 }
 0x91b   :  { %3045 = vmatpush3.bf16.msra.mxu1 %v3044_v62  ;;  %2854 = vmatprep.mubr.msk.f32.mxu1 %vm3210_vm1, %v3209_v2 }
 0x91c   :  { %3046 = vmatprep.subr.bf16.mxu1 %v3212_v41 }
 0x91f   :  { %3048 = vmatpush3.bf16.msra.mxu1 %v3047_v1 }
 0x920   :  { %3055 = vmatprep.subr.bf16.mxu1 %v3212_v41 }
 0x9ed   :  { %v1372_v3 = vpop.f32.mrb[14].mxu1 }
 0x9ee   :  { %v2845_v4 = vpop.f32.mrb[15].mxu1  ;;  %2855 = vmatmul.mubr.msk.f32.vlgmr.msra.gmra.mrb[16].mxu1 %vm266_vm6, %v1372_v3 }
 0x9ef   :  { %2876 = vmatprep.mubr.msk.f32.mxu1 %vm3210_vm1, %v3209_v2  ;;  %3057 = vmatpush3.bf16.msra.mxu1 %v3056_v7 }
 0x9f0   :  { %3058 = vmatprep.subr.bf16.mxu1 %v3212_v41 }
 0x9f3   :  { %3060 = vmatpush3.bf16.msra.mxu1 %v3059_v10  ;;  %v2554_v10 = vld [vmem:[%s3751_s7 + $0x2] ss:$0 sm:$0xff] }
 0x9f4   :  { %3078 = vmatprep.subr.bf16.mxu1 %v3077_v52 }
 0xac1   :  { %v1454_v11 = vpop.f32.mrb[16].mxu1 }
 0xac2   :  { %v1528_v13 = vadd.f32 %v3533_v33, %v1454_v11  ;;  %v2856_v15 = vpop.f32.mrb[17].mxu1  ;;  %v3061_v33 = vpack.c.bf16 %v2538_v29, %v2537_v27 }
 0xac4   :  { %v1539_v17 = vadd.f32 %v2520_v12, %v1528_v13 }
 0xac6   :  { %v2521_v18 = vmul.f32 -1.442695, %v1539_v17 }
 0xac8   :  { %3161 = vpow2.f32 %v2521_v18 }
 0xad2   :  { %v3162_v19 = vpop.eup %3161 }
 0xad3   :  { %v1543_v21 = vadd.f32 1.0, %v3162_v19 }
 0xad5   :  { %3163 = vrcp.f32 %v1543_v21 }
 0xadf   :  { %v3164_v22 = vpop.eup %3163 }
 0xae0   :  { %v1546_v14 = vmul.f32 %v3164_v22, %v1539_v17 }
 0xae2   :  { %2877 = vmatmul.mubr.msk.f32.vlgmr.msra.gmra.mrb[18].mxu1 %vm266_vm6, %v1546_v14 }
 0xae3   :  { %3080 = vmatpush3.bf16.msra.mxu1 %v3077_v52 }
 0xae4   :  { %3082 = vmatprep.subr.bf16.mxu1 %v3081_v55 }
 0xae7   :  { %3084 = vmatpush3.bf16.msra.mxu1 %v3081_v55 }
 0xae8   :  { %3085 = vmatprep.subr.bf16.mxu1 %v3212_v41 }
 0xbb5   :  { %v1629_v26 = vpop.f32.mrb[18].mxu1 }
 0xbb6   :  { %v1630_v30 = vadd.f32 %v2527_v25, %v1629_v26  ;;  %v2878_v31 = vpop.f32.mrb[19].mxu1 }
 0xbb7   :  { %v2565_v31 = vld [vmem:[%s3752_s8 + $0xa8] sm:$0xff] }
 0xbb8   :  { %v3592_v32 = vadd.f32 %v1630_v30, %v3465_v58  ;;  %v2539_v58 = vld [vmem:[%s3748_s4 + $0xb0] sm:$0xff]  ;;  %v2564_v30 = vld [vmem:[%s3752_s8 + $0xa0] sm:$0xff] }
 0xbb9   :  { %v3065_v35 = vpack.c.bf16 %v2540_v34, %v2539_v58  ;;  %v3089_v58 = vpack.c.bf16 %v2565_v31, %v2564_v30  ;;  %v2566_v34 = vld [vmem:[%s3752_s8 + $0xb0] sm:$0xff] }
 0xbba   :  { %2879 = vmatprep.subr.mxu0 %v3592_v32 }
 0xbbb   :  { %2880 = vmatpush3.msra.mxu0 %v3592_v32 }
 0xbbc   :  { %2882 = vmatmul.mubr.msk.f32.vlgmr.msra.gmra.mrb[14].mxu0 %vm57_vm0, %v3324_v16  ;;  %3062 = vmatprep.subr.bf16.mxu0 %v3061_v33  ;;  %v2533_v16 = vld [vmem:[%s3748_s4 + $0x80] sm:$0xff] }
 0xbbd   :  { %2884 = vmatprep.mubr.msk.f32.mxu0 %vm57_vm0, %v3333_v23  ;;  %3064 = vmatpush3.bf16.msra.mxu0 %v3061_v33  ;;  %v2534_v23 = vld [vmem:[%s3748_s4 + $0x88] sm:$0xff] }
 0xbbe   :  { %3066 = vmatprep.subr.bf16.mxu0 %v3065_v35 }
 0xbc0   :  { %2885 = vmatmul.mubr.msk.f32.gmra.mrb[16].mxu0 %vm57_vm0, %v3342_v24  ;;  %v3069_v24 = vpack.c.bf16 %v2534_v23, %v2533_v16 }
 0xbc1   :  { %3068 = vmatpush3.bf16.msra.mxu0 %v3065_v35  ;;  %v2567_v35 = vld [vmem:[%s3752_s8 + $0xb8] sm:$0xff] }
 0xbc2   :  { %3070 = vmatprep.subr.bf16.mxu0 %v3069_v24  ;;  %v3092_v16 = vpack.c.bf16 %v2567_v35, %v2566_v34 }
 0xc8f   :  { %v2883_v36 = vpop.f32.mrb[14].mxu0 }
 0xc90   :  { %v1700_v37 = vpop.f32.mrb[15].mxu0 }
 0xc93   :  { %v2886_v40 = vpop.f32.mrb[16].mxu0 }
 0xc94   :  { %v1710_v42 = vpop.f32.mrb[17].mxu0 }
 0xc95   :  { %2895 = vmatprep.mubr.msk.f32.mxu0 %vm266_vm6, %v1710_v42  ;;  %v2351_v42 = vld [vmem:[%s3756_s12 + $0x8] sm:$0xff] }
 0xc96   :  { %2896 = vmatmul.mubr.msk.f32.vlgmr.msra.gmra.mrb[18].mxu0 %vm266_vm6, %v2886_v40  ;;  %v2350_v40 = vld [vmem:[%s3756_s12] sm:$0xff] }
 0xc97   :  { %3072 = vmatpush3.bf16.msra.mxu0 %v3069_v24  ;;  %2906 = vmatprep.mubr.msk.f32.mxu0 %vm266_vm6, %v1700_v37 }
 0xc98   :  { %3074 = vmatprep.subr.bf16.mxu0 %v3073_v43 }
 0xc9b   :  { %3076 = vmatpush3.bf16.msra.mxu0 %v3073_v43  ;;  %v3107_v43 = vpack.c.bf16 %v2351_v42, %v2350_v40 }
 0xc9c   :  { %3094 = vmatprep.subr.bf16.mxu0 %v3212_v41 }
 0xc9e   :  { %2907 = vmatmul.mubr.msk.f32.vlgmr.msra.gmra.mrb[18].mxu0 %vm266_vm6, %v2883_v36  ;;  %v2574_v36 = vld [vmem:[%s3754_s10 + $0x48] sm:$0xff] }
 0xc9f   :  { %3096 = vmatpush3.bf16.msra.mxu0 %v3095_v46  ;;  %2946 = vmatprep.mubr.msk.f32.mxu0 %vm3210_vm1, %v3209_v2 }
 0xca0   :  { %3097 = vmatprep.subr.bf16.mxu0 %v3212_v41 }
 0xca3   :  { %3099 = vmatpush3.bf16.msra.mxu0 %v3098_v49 }
 0xca4   :  { %3106 = vmatprep.subr.bf16.mxu0 %v3212_v41 }
 0xca6   :  { %2947 = vmatmul.mubr.msk.f32.vlgmr.msra.gmra.mrb[20].mxu0 %vm266_vm6, %v3592_v32 }
 0xca7   :  { %2968 = vmatprep.mubr.msk.f32.mxu0 %vm3210_vm1, %v3209_v2  ;;  %3108 = vmatpush3.bf16.msra.mxu0 %v3107_v43 }
 0xca8   :  { %3109 = vmatprep.subr.bf16.mxu0 %v3212_v41 }
 0xd71   :  { %v2908_v57 = vpop.f32.mrb[18].mxu0 }
 0xd72   :  { %v1899_v59 = vadd.f32 %v2908_v57, %v2546_v56  ;;  %v1881_v20 = vpop.f32.mrb[19].mxu0 }
 0xd73   :  { %v1898_v60 = vadd.f32 %v2546_v56, %v1881_v20  ;;  %v2578_v56 = vld [vmem:[%s3755_s11 + $0x2] ss:$0 sm:$0xff]  ;;  %s3185_s11 = scalar_lea.vmem %s2442_s15, 128 }
 0xd74   :  { %v2548_v61 = vmul.f32 -1.442695, %v1899_v59  ;;  %p3186_p0 = scmp.ne.s32.totalorder %s2442_s15, %s3185_s11  ;;  %p3191_p2 = scmp.lt.s32.totalorder %s3185_s11, %s3185_s11 }
 0xd75   :  { %v2547_v62 = vmul.f32 -1.442695, %v1898_v60 }
 0xd76   :  { %3165 = vpow2.f32 %v2548_v61  ;;  %v2580_v61 = vld [vmem:[%s3757_s13] ss:$0 sm:$0xff]  ;;  %p3192_p3 = por %p3191_p2, %p3190_p1 }
 0xd77   :  { %3167 = vpow2.f32 %v2547_v62 }
 0xd78   :  { %p3193_p4 = pnand %p3192_p3, %p3186_p0 }
 0xd79   :  { %v3661_v63 = vpop.f32.mrb[20].mxu0 }
 0xd7a   :  { %v2948_v0 = vpop.f32.mrb[21].mxu0 }
 0xd80   :  { %v3166_v1 = vpop.eup %3165 }
 0xd81   :  { %v3168_v3 = vpop.eup %3167  ;;  %v1907_v4 = vadd.f32 1.0, %v3166_v1 }
 0xd82   :  { %v1906_v5 = vadd.f32 1.0, %v3168_v3 }
 0xd83   :  { %3169 = vrcp.f32 %v1907_v4 }
 0xd84   :  { %3171 = vrcp.f32 %v1906_v5 }
 0xd8d   :  { %v3170_v6 = vpop.eup %3169 }
 0xd8e   :  { %v3172_v7 = vpop.eup %3171  ;;  %v1913_v9 = vmul.f32 %v3170_v6, %v1899_v59 }
 0xd8f   :  { %v1912_v8 = vmul.f32 %v3172_v7, %v1898_v60 }
 0xd91   :  { %2917 = vmatprep.mubr.msk.f32.mxu1 %vm266_vm6, %v1912_v8 }
 0xd92   :  { %2918 = vmatmul.mubr.msk.f32.vlgmr.msra.gmra.mrb[20].mxu1 %vm266_vm6, %v1913_v9 }
 0xd93   :  { %2924 = vmatprep.mubr.msk.f32.mxu1 %vm3210_vm1, %v3209_v2 }
 0xe65   :  { %v2919_v11 = vpop.f32.mrb[20].mxu1 }
 0xe66   :  { %v2005_v12 = vadd.f32 %v2919_v11, %v2554_v10  ;;  %v1999_v13 = vpop.f32.mrb[21].mxu1 }
 0xe67   :  { %v2000_v15 = vadd.f32 %v2554_v10, %v1999_v13 }
 0xe68   :  { %v2558_v17 = vmul.f32 -1.442695, %v2005_v12 }
 0xe69   :  { %v2557_v18 = vmul.f32 -1.442695, %v2000_v15 }
 0xe6a   :  { %3173 = vpow2.f32 %v2558_v17 }
 0xe6b   :  { %3175 = vpow2.f32 %v2557_v18 }
 0xe74   :  { %v3174_v19 = vpop.eup %3173 }
 0xe75   :  { %v3176_v21 = vpop.eup %3175  ;;  %v2015_v22 = vadd.f32 1.0, %v3174_v19 }
 0xe76   :  { %v2014_v14 = vadd.f32 1.0, %v3176_v21 }
 0xe77   :  { %3177 = vrcp.f32 %v2015_v22 }
 0xe78   :  { %3179 = vrcp.f32 %v2014_v14 }
 0xe81   :  { %v3178_v25 = vpop.eup %3177 }
 0xe82   :  { %v3180_v26 = vpop.eup %3179  ;;  %v2021_v27 = vmul.f32 %v3178_v25, %v2005_v12 }
 0xe83   :  { %v2020_v29 = vmul.f32 %v3180_v26, %v2000_v15 }
 0xe85   :  { %v3086_v33 = vpack.c.bf16 %v2021_v27, %v2020_v29 }
 0xe87   :  { %3087 = vmatpush3.bf16.msra.mxu1 %v3086_v33 }
 0xe88   :  { %3088 = vmatprep.subr.bf16.mxu1 %v3212_v41 }
 0xe8a   :  { %2925 = vmatmul.mubr.msk.f32.vlgmr.msra.gmra.mrb[22].mxu1 %vm590_vm7, %v3419_v28  ;;  %v2573_v28 = vld [vmem:[%s3754_s10 + $0x40] sm:$0xff] }
 0xe8b   :  { %3090 = vmatpush3.bf16.msra.mxu1 %v3089_v58  ;;  %2935 = vmatprep.mubr.msk.f32.mxu1 %vm3210_vm1, %v3209_v2  ;;  %v3101_v37 = vpack.c.bf16 %v2574_v36, %v2573_v28 }
 0xe8c   :  { %3091 = vmatprep.subr.bf16.mxu1 %v3212_v41 }
 0xe8f   :  { %3093 = vmatpush3.bf16.msra.mxu1 %v3092_v16 }
 0xe90   :  { %3100 = vmatprep.subr.bf16.mxu1 %v3212_v41 }
 0xf5d   :  { %v2088_v23 = vpop.f32.mrb[22].mxu1 }
 0xf5e   :  { %v2926_v24 = vpop.f32.mrb[23].mxu1  ;;  %2936 = vmatmul.mubr.msk.f32.vlgmr.msra.gmra.mrb[24].mxu1 %vm266_vm6, %v2088_v23 }
 0xf5f   :  { %2957 = vmatprep.mubr.msk.f32.mxu1 %vm3210_vm1, %v3209_v2  ;;  %3102 = vmatpush3.bf16.msra.mxu1 %v3101_v37  ;;  %v2576_v2 = vld [vmem:[%s3754_s10 + $0x58] sm:$0xff] }
 0xf60   :  { %3103 = vmatprep.subr.bf16.mxu1 %v3212_v41  ;;  %v3104_v39 = vpack.c.bf16 %v2576_v2, %v2575_v38  ;;  %v2352_v41 = vld [vmem:[%s3756_s12 + $0x10] sm:$0xff] }
 0xf61   :  { %v3110_v55 = vpack.c.bf16 %v2353_v54, %v2352_v41 }
 0xf63   :  { %3105 = vmatpush3.bf16.msra.mxu1 %v3104_v39  ;;  %3111 = vmatpush3.bf16.msra.mxu0 %v3110_v55 }
0x1031   :  { %v2170_v44 = vpop.f32.mrb[24].mxu1 }
0x1032   :  { %v2244_v46 = vadd.f32 %v3661_v63, %v2170_v44  ;;  %v2937_v47 = vpop.f32.mrb[25].mxu1 }
0x1034   :  { %v2255_v48 = vadd.f32 %v2571_v45, %v2244_v46 }
0x1036   :  { %v2572_v49 = vmul.f32 -1.442695, %v2255_v48 }
0x1038   :  { %3181 = vpow2.f32 %v2572_v49 }
0x1042   :  { %v3182_v50 = vpop.eup %3181 }
0x1043   :  { %v2259_v51 = vadd.f32 1.0, %v3182_v50 }
0x1045   :  { %3183 = vrcp.f32 %v2259_v51 }
0x104f   :  { %v3184_v52 = vpop.eup %3183 }
0x1050   :  { %v2262_v53 = vmul.f32 %v3184_v52, %v2255_v48 }
0x1052   :  { %2958 = vmatmul.mubr.msk.f32.vlgmr.msra.gmra.mrb[26].mxu1 %vm266_vm6, %v2262_v53 }
0x1125   :  { %v2345_v57 = vpop.f32.mrb[26].mxu1 }
0x1126   :  { %v2346_v59 = vadd.f32 %v2578_v56, %v2345_v57  ;;  %v2959_v20 = vpop.f32.mrb[27].mxu1 }
0x1128   :  { %v2349_v60 = vadd.f32 %v2346_v59, %v3592_v32 }
0x112a   :  { %2969 = vmatmul.mubr.msk.f32.vlgmr.msra.gmra.mrb[22].mxu0 %vm266_vm6, %v2349_v60 }
0x11fd   :  { %v2430_v62 = vpop.f32.mrb[22].mxu0 }
0x11fe   :  { %v2431_v63 = vadd.f32 %v2580_v61, %v2430_v62  ;;  %v2970_v0 = vpop.f32.mrb[23].mxu0 }
0x1200   :  { %2434 = vst.msk [vmem:[#allocation2] sm:$0xff] %vm57_vm0, %v2431_v63 }
0x1201   :  { %3196 = shalt.err (!%p3193_p4)
}
0x1202   :  { %s3197_s17 = scalar_lea.hbm %s3758_s14, 128 }
0x1203   :  { %p3198_p5 = scmp.ne.s32.totalorder %s3758_s14, %s3197_s17  ;;  %p3201_p6 = scmp.lt.u32.totalorder %s3197_s17, %s3758_s14 }
0x1205   :  { %p3203_p7 = pnand %p3201_p6, %p3198_p5 }
0x1207   :  { %3206 = shalt.err (!%p3203_p7)
}
0x1208   :  { %2444 = dma.vmem_to_hbm [thread:$0]  %s2442_s15, 128, %s3758_s14, [#allocation3]  }
0x1209   :  { %3207 = dma.done.wait [#allocation3], 128  }
0x120a   :  { %3208 = vsyncadd [#allocation3], 4294967168 }
0x120b   :  { %2448 = vsyncpa [#allocation3], 1 }

</bundles_post_ra>
